<compile_context>
chip_gen: v6e
topology: v6e:2x2x1
jax: 0.10.0
libtpu: 0.0.40
codegen_flags: <defaults>
</compile_context>

<pallas_src>
import math
import functools

import jax
import jax.numpy as jnp
from jax.experimental import pallas as pl
from jax.experimental.pallas import tpu as pltpu


def _gaussian_taps_1d(kernel_size, sigma):
    """Normalized 1-D Gaussian taps as Python floats.

    The module's normalized 2-D kernel is exactly the outer product of these
    taps (the 1/(sigma*sqrt(2*pi)) prefactors cancel in the normalization), so
    the separable two-pass convolution reproduces the depthwise 2-D conv.
    """
    mean = (kernel_size - 1) / 2.0
    g = [math.exp(-(((i - mean) / float(sigma)) ** 2) / 2.0) for i in range(kernel_size)]
    s = sum(g)
    return tuple(v / s for v in g)


def _gaussian_kernel_weights(channels, kernel_size, sigma, dim=2):
    """Deterministic replica of GaussianSmoothing.__init__ weight construction
    (used only to build the lax.conv reference in __main__)."""
    if isinstance(kernel_size, (int, float)):
        kernel_size = [int(kernel_size)] * dim
    if isinstance(sigma, (int, float)):
        sigma = [float(sigma)] * dim
    meshgrids = jnp.meshgrid(
        *[jnp.arange(s, dtype=jnp.float32) for s in kernel_size], indexing="ij"
    )
    kernel = jnp.ones((), jnp.float32)
    for size, std, mgrid in zip(kernel_size, sigma, meshgrids):
        mean = (size - 1) / 2
        kernel = kernel * (
            1.0 / (std * math.sqrt(2 * math.pi))
            * jnp.exp(-(((mgrid - mean) / std) ** 2) / 2)
        )
    kernel = kernel / jnp.sum(kernel)
    kernel = kernel.reshape(1, 1, *kernel.shape)          # (1, 1, K, K)
    kernel = jnp.tile(kernel, (channels,) + (1,) * (kernel.ndim - 1))
    return kernel                                          # (C, 1, K, K)


def _smoothing_kernel(xp_ref, o_ref, tmp_ref, *, taps):
    # xp_ref:  (N, C, Hp, Wp)      zero-padded input (pad fused in by XLA)
    # o_ref:   (N, C, H_out, W_out)
    # tmp_ref: (N, C, Hp, W_out) f32  scratch holding the horizontal-pass result
    K = len(taps)
    _, _, H_out, W_out = o_ref.shape

    def symmetric_sum(load_window):
        # Gaussian taps are symmetric (taps[j] == taps[K-1-j]); fold mirrored
        # windows with one add so each pass costs only ceil(K/2) multiplies.
        acc = None
        for j in range((K + 1) // 2):
            jj = K - 1 - j
            w = load_window(j) if jj == j else load_window(j) + load_window(jj)
            term = taps[j] * w
            acc = term if acc is None else acc + term
        return acc

    # Horizontal (lane-axis) pass: K static lane-offset window loads from the
    # input ref, accumulated in f32, written once to the VMEM scratch.
    tmp_ref[...] = symmetric_sum(
        lambda j: xp_ref[:, :, :, pl.ds(j, W_out)].astype(jnp.float32)
    )

    # Vertical (sublane-axis) pass: sublane-offset Ref loads are pure address
    # arithmetic on the vld slots — no value-level sublane relayout chains.
    acc = symmetric_sum(lambda i: tmp_ref[:, :, pl.ds(i, H_out), :])
    o_ref[...] = acc.astype(o_ref.dtype)


def gaussian_smoothing(x, kernel_size, sigma):
    """Depthwise Gaussian 2D smoothing; same semantics as the PyTorch module's
    F.conv2d(groups=C, padding=kernel_size // 2).  x: (N, C, H, W)."""
    N, C, H, W = x.shape
    pad = kernel_size // 2
    Hp, Wp = H + 2 * pad, W + 2 * pad
    H_out = Hp - kernel_size + 1
    W_out = Wp - kernel_size + 1
    taps = _gaussian_taps_1d(kernel_size, sigma)

    # Zero-pad in the wrapper; allow_input_fusion lets XLA fuse the pad into the
    # pallas_call operand, so the kernel no longer needs a zeroed scratch plus a
    # misaligned interior store, and no extra HBM round trip is paid under jit.
    xp = jnp.pad(x, ((0, 0), (0, 0), (pad, pad), (pad, pad)))

    # Note: at production C/H/W, add a channel-tile grid axis (fold N*C into one
    # "parallel" axis) so the blocks + f32 scratch fit v7x's 64 MiB VMEM.
    kernel = functools.partial(_smoothing_kernel, taps=taps)
    return pl.pallas_call(
        kernel,
        out_shape=jax.ShapeDtypeStruct((N, C, H_out, W_out), x.dtype),
        # Single invocation, whole-problem blocks (~8 KiB total): any grid at
        # this size only adds fixed per-step overhead.
        scratch_shapes=[pltpu.VMEM((N, C, Hp, W_out), jnp.float32)],
        compiler_params=pltpu.CompilerParams(allow_input_fusion=[True]),
    )(xp)


if __name__ == "__main__":
    # Module hyperparameters (synthetic, deterministic).
    channels = 4
    kernel_size = 5
    sigma = 1.0
    padding = kernel_size // 2

    key = jax.random.PRNGKey(0)
    x = jax.random.normal(key, (2, channels, 16, 16), dtype=jnp.float32)

    smooth = jax.jit(
        functools.partial(gaussian_smoothing, kernel_size=kernel_size, sigma=sigma)
    )
    out = jax.block_until_ready(smooth(x))

    # Reference: module-equivalent 2-D weights + depthwise conv via lax
    # (same semantics as F.conv2d(groups=C, padding=K//2)).
    weight = _gaussian_kernel_weights(channels, kernel_size, sigma, dim=2)
    ref = jax.lax.conv_general_dilated(
        x, weight,
        window_strides=(1, 1),
        padding=[(padding, padding), (padding, padding)],
        dimension_numbers=("NCHW", "OIHW", "NCHW"),
        feature_group_count=channels,
    )
    assert out.shape == ref.shape
    assert jnp.allclose(out, ref, rtol=1e-4, atol=1e-4)

    print("KERNEL_OK")
</pallas_src>

<mosaic_0001>
module attributes {stable_mosaic.version = 11 : i64} {
  func.func @_smoothing_kernel(%arg0: memref<2x4x20x20xf32, #tpu.memory_space<vmem>>, %arg1: memref<2x4x16x16xf32, #tpu.memory_space<vmem>>, %arg2: memref<2x4x20x16xf32, #tpu.memory_space<vmem>>) attributes {dimension_semantics = [], scalar_prefetch = 0 : i64, scratch_operands = 1 : i64, tpu.core_type = #tpu.core_type<tc>} {
    %c0 = arith.constant 0 : index
    %c0_0 = arith.constant 0 : index
    %c0_1 = arith.constant 0 : index
    %c0_2 = arith.constant 0 : index
    %0 = vector.load %arg0[%c0, %c0_0, %c0_1, %c0_2] : memref<2x4x20x20xf32, #tpu.memory_space<vmem>>, vector<2x4x20x16xf32>
    %c0_3 = arith.constant 0 : index
    %c0_4 = arith.constant 0 : index
    %c0_5 = arith.constant 0 : index
    %c4 = arith.constant 4 : index
    %1 = vector.load %arg0[%c0_3, %c0_4, %c0_5, %c4] : memref<2x4x20x20xf32, #tpu.memory_space<vmem>>, vector<2x4x20x16xf32>
    %2 = arith.addf %0, %1 : vector<2x4x20x16xf32>
    %cst = arith.constant 0.054488685 : f32
    %3 = vector.broadcast %cst : f32 to vector<2x4x20x16xf32>
    %4 = arith.mulf %3, %2 : vector<2x4x20x16xf32>
    %c0_6 = arith.constant 0 : index
    %c0_7 = arith.constant 0 : index
    %c0_8 = arith.constant 0 : index
    %c1 = arith.constant 1 : index
    %5 = vector.load %arg0[%c0_6, %c0_7, %c0_8, %c1] : memref<2x4x20x20xf32, #tpu.memory_space<vmem>>, vector<2x4x20x16xf32>
    %c0_9 = arith.constant 0 : index
    %c0_10 = arith.constant 0 : index
    %c0_11 = arith.constant 0 : index
    %c3 = arith.constant 3 : index
    %6 = vector.load %arg0[%c0_9, %c0_10, %c0_11, %c3] : memref<2x4x20x20xf32, #tpu.memory_space<vmem>>, vector<2x4x20x16xf32>
    %7 = arith.addf %5, %6 : vector<2x4x20x16xf32>
    %cst_12 = arith.constant 0.244201347 : f32
    %8 = vector.broadcast %cst_12 : f32 to vector<2x4x20x16xf32>
    %9 = arith.mulf %8, %7 : vector<2x4x20x16xf32>
    %10 = arith.addf %4, %9 : vector<2x4x20x16xf32>
    %c0_13 = arith.constant 0 : index
    %c0_14 = arith.constant 0 : index
    %c0_15 = arith.constant 0 : index
    %c2 = arith.constant 2 : index
    %11 = vector.load %arg0[%c0_13, %c0_14, %c0_15, %c2] : memref<2x4x20x20xf32, #tpu.memory_space<vmem>>, vector<2x4x20x16xf32>
    %cst_16 = arith.constant 0.402619958 : f32
    %12 = vector.broadcast %cst_16 : f32 to vector<2x4x20x16xf32>
    %13 = arith.mulf %12, %11 : vector<2x4x20x16xf32>
    %14 = arith.addf %10, %13 : vector<2x4x20x16xf32>
    %c0_17 = arith.constant 0 : index
    %c0_18 = arith.constant 0 : index
    %c0_19 = arith.constant 0 : index
    %c0_20 = arith.constant 0 : index
    %15 = vector.load %arg2[%c0_17, %c0_18, %c0_19, %c0_20] : memref<2x4x20x16xf32, #tpu.memory_space<vmem>>, vector<2x4x20x16xf32>
    tpu.vector_store %arg2[%c0_17, %c0_18, %c0_19, %c0_20], %14 {strides = array<i32>} : memref<2x4x20x16xf32, #tpu.memory_space<vmem>>, vector<2x4x20x16xf32>,
    %c0_21 = arith.constant 0 : index
    %c0_22 = arith.constant 0 : index
    %c0_23 = arith.constant 0 : index
    %c0_24 = arith.constant 0 : index
    %16 = vector.load %arg2[%c0_21, %c0_22, %c0_23, %c0_24] : memref<2x4x20x16xf32, #tpu.memory_space<vmem>>, vector<2x4x16x16xf32>
    %c0_25 = arith.constant 0 : index
    %c0_26 = arith.constant 0 : index
    %c4_27 = arith.constant 4 : index
    %c0_28 = arith.constant 0 : index
    %17 = vector.load %arg2[%c0_25, %c0_26, %c4_27, %c0_28] : memref<2x4x20x16xf32, #tpu.memory_space<vmem>>, vector<2x4x16x16xf32>
    %18 = arith.addf %16, %17 : vector<2x4x16x16xf32>
    %cst_29 = arith.constant 0.054488685 : f32
    %19 = vector.broadcast %cst_29 : f32 to vector<2x4x16x16xf32>
    %20 = arith.mulf %19, %18 : vector<2x4x16x16xf32>
    %c0_30 = arith.constant 0 : index
    %c0_31 = arith.constant 0 : index
    %c1_32 = arith.constant 1 : index
    %c0_33 = arith.constant 0 : index
    %21 = vector.load %arg2[%c0_30, %c0_31, %c1_32, %c0_33] : memref<2x4x20x16xf32, #tpu.memory_space<vmem>>, vector<2x4x16x16xf32>
    %c0_34 = arith.constant 0 : index
    %c0_35 = arith.constant 0 : index
    %c3_36 = arith.constant 3 : index
    %c0_37 = arith.constant 0 : index
    %22 = vector.load %arg2[%c0_34, %c0_35, %c3_36, %c0_37] : memref<2x4x20x16xf32, #tpu.memory_space<vmem>>, vector<2x4x16x16xf32>
    %23 = arith.addf %21, %22 : vector<2x4x16x16xf32>
    %cst_38 = arith.constant 0.244201347 : f32
    %24 = vector.broadcast %cst_38 : f32 to vector<2x4x16x16xf32>
    %25 = arith.mulf %24, %23 : vector<2x4x16x16xf32>
    %26 = arith.addf %20, %25 : vector<2x4x16x16xf32>
    %c0_39 = arith.constant 0 : index
    %c0_40 = arith.constant 0 : index
    %c2_41 = arith.constant 2 : index
    %c0_42 = arith.constant 0 : index
    %27 = vector.load %arg2[%c0_39, %c0_40, %c2_41, %c0_42] : memref<2x4x20x16xf32, #tpu.memory_space<vmem>>, vector<2x4x16x16xf32>
    %cst_43 = arith.constant 0.402619958 : f32
    %28 = vector.broadcast %cst_43 : f32 to vector<2x4x16x16xf32>
    %29 = arith.mulf %28, %27 : vector<2x4x16x16xf32>
    %30 = arith.addf %26, %29 : vector<2x4x16x16xf32>
    %c0_44 = arith.constant 0 : index
    %c0_45 = arith.constant 0 : index
    %c0_46 = arith.constant 0 : index
    %c0_47 = arith.constant 0 : index
    %31 = vector.load %arg1[%c0_44, %c0_45, %c0_46, %c0_47] : memref<2x4x16x16xf32, #tpu.memory_space<vmem>>, vector<2x4x16x16xf32>
    tpu.vector_store %arg1[%c0_44, %c0_45, %c0_46, %c0_47], %30 {strides = array<i32>} : memref<2x4x16x16xf32, #tpu.memory_space<vmem>>, vector<2x4x16x16xf32>,
    return
  }
}

</mosaic_0001>

<bundles_post_ra>
// kernel: gaussian_smoothing.2
= control target key start
LH: loop header
LB: loop body
LE: loop exit
PB: predicated region body
PF: predicated region fallthrough
CT: control target
= control target key end

     0   :  { %s2048_s0 = inlined_call_operand.hbm [shape: f32[2,4,16,16], index: 0, kind: input, shape index: {}]   ;;  %s2049_s1 = inlined_call_operand.<no memory space> [shape: f32[], index: 1, kind: input, shape index: {}]   ;;  %s2050_s2 = inlined_call_operand.hbm [shape: f32[2,4,16,16], index: 2, kind: output, shape index: {}]  }
   0x1   :  { %v1401_v0 = vstv %s2049_s1 }
   0x2   :  { %8 = vsyncpa [#allocation9], 0 }
   0x3   :  { %9 = vsyncpa [#allocation10], 0 }
   0x4   :  { %17 = vsyncadd [#allocation9], 1024  ;;  %s29_s11 = sld [smem:[#allocation0]]   ;;  %s1368_s12 = smov [#allocation8 + $0x8]  }
   0x5   :  { %s37_s13 = sshll.u32 %s1368_s12, 4  ;;  %s1369_s14 = smov 256   ;;  %s38_s13 = int_to_ptr.vmem [resolvable:$true] %s37_s13 }
   0x6   :  { %44 = sst [smem:[#allocation13]] %s1369_s14  ;;  %s1370_s15 = smov 384  }
   0x7   :  { %46 = sst [smem:[#allocation13 + $0x1]] %s1370_s15  ;;  %s1371_s16 = smov 2  }
   0x8   :  { %48 = sst [smem:[#allocation13 + $0x2]] %s1371_s16  ;;  %s1372_s18 = smov 128  }
   0x9   :  { %50 = sst [smem:[#allocation13 + $0x3]] %s1372_s18  ;;  %s1373_s1 = smov 8  }
   0xa   :  { %s1327_s17 = sshll.u32 %s29_s11, 26  ;;  %52 = sst [smem:[#allocation13 + $0x4]] %s1372_s18 }
   0xb   :  { %s1328_s19 = sadd.s32 134217728, %s1327_s17  ;;  %54 = sst [smem:[#allocation13 + $0x5]] %s1373_s1 }
   0xc   :  { %s1374_s20 = smov [#allocation9]   ;;  %s1375_s21 = smov 131072  }
   0xd   :  { %56 = dma.general %s2048_s0, 2048, %s38_s13, %s1374_s20, %s1375_s21, [#allocation13], %s1328_s19, 0  }
   0xe   :  { %1364 = dma.done.wait [#allocation9], 3072  }
   0xf   :  { %1365 = vsyncadd [#allocation9], 4294964224  ;;  %v67_v1 = vlaneseq  ;;  %vm72_vm1 = vcmask 1045504   ;;  %v65_v4 = vld [vmem:[#allocation8 + $0x8] sm:$0xff]  ;;  %v85_v5 = vld [vmem:[#allocation8 + $0x10] sm:$0xff]  ;;  %s1376_s0 = smov 2  }
  0x10   :  { %v121_v6 = vld [vmem:[#allocation8 + $0x20] sm:$0xff]  ;;  %v143_v10 = vld [vmem:[#allocation8 + $0x28] sm:$0xff]  ;;  %v179_v15 = vld [vmem:[#allocation8 + $0x38] sm:$0xff]  ;;  %s1377_s24 = smov 124   ;;  %s1378_s25 = smov 126   ;;  %vm1076_vm3 = vcmask 130048  }
  0x11   :  { %v1406_v2 = vand.u32 127, %v67_v1  ;;  %v201_v16 = vld [vmem:[#allocation8 + $0x40] sm:$0xff]  ;;  %v237_v28 = vld [vmem:[#allocation8 + $0x50] sm:$0xff]  ;;  %v259_v36 = vld [vmem:[#allocation8 + $0x58] sm:$0xff]  ;;  %s1379_s26 = smov 127   ;;  %vm1079_vm4 = vcmask 125952  }
  0x12   :  { %v295_v44 = vld [vmem:[#allocation8 + $0x68] sm:$0xff]  ;;  %v317_v45 = vld [vmem:[#allocation8 + $0x70] sm:$0xff]  ;;  %v353_v54 = vld [vmem:[#allocation8 + $0x80] sm:$0xff]  ;;  %s1380_s27 = smov [#allocation11]  }
  0x13   :  { %v1409_v3 = vadd.s32 128, %v1406_v2  ;;  %vm77_vm2 = vcmp.lt.s32.totalorder %v1406_v2, 126  ;;  %v375_v62 = vld [vmem:[#allocation8 + $0x88] sm:$0xff]  ;;  %s1315_s28 = sshll.u32 %s1380_s27, 4  ;;  %s1316_s28 = int_to_ptr.vmem [resolvable:$true] %s1315_s28 }
  0x14   :  { %s1344_s29 = scalar_lea.vmem %s1316_s28, 2048  ;;  %p1349_p1 = scmp.lt.s32.totalorder %s1316_s28, %s1316_s28 }
  0x15   :  { %vm70_vm0 = vcmp.lt.s32.totalorder %v1409_v3, 144  ;;  %p1345_p0 = scmp.ne.s32.totalorder %s1316_s28, %s1344_s29  ;;  %p1350_p2 = scmp.lt.s32.totalorder %s1344_s29, %s1344_s29 }
  0x16   :  { %v71_v7 = vsel %vm70_vm0, %v65_v4, %v1401_v0  ;;  %v91_v8 = vsel %vm70_vm0, %v85_v5, %v1401_v0  ;;  %v128_v9 = vsel %vm70_vm0, %v121_v6, %v1401_v0  ;;  %v149_v21 = vsel %vm70_vm0, %v143_v10, %v1401_v0  ;;  %v433_v10 = vld [vmem:[#allocation8 + $0xa0] sm:$0xff] }
  0x17   :  { %v73_v11 = vsel %vm72_vm1, %v71_v7, %v1401_v0  ;;  %v106_v12 = vsel %vm72_vm1, %v1401_v0, %v91_v8  ;;  %v93_v13 = vsel %vm72_vm1, %v91_v8, %v71_v7  ;;  %v130_v14 = vsel %vm72_vm1, %v128_v9, %v1401_v0  ;;  %p1351_p3 = por %p1350_p2, %p1349_p1 }
  0x18   :  { %v74_v17 = vrot.slane %v73_v11, 6  ;;  %v107_v18 = vrot.slane %v106_v12, 6  ;;  %v94_v19 = vrot.slane %v93_v13, 6  ;;  %v131_v20 = vrot.slane %v130_v14, 6 }
  0x19   :  { %v186_v24 = vsel %vm70_vm0, %v179_v15, %v1401_v0  ;;  %v207_v25 = vsel %vm70_vm0, %v201_v16, %v1401_v0  ;;  %v151_v26 = vsel %vm72_vm1, %v149_v21, %v128_v9  ;;  %v164_v27 = vsel %vm72_vm1, %v1401_v0, %v149_v21  ;;  %v411_v9 = vld [vmem:[#allocation8 + $0x98] sm:$0xff]  ;;  %p1352_p4 = pnand %p1351_p3, %p1345_p0 }
  0x1a   :  { %v78_v22 = vsel %vm77_vm2, %v74_v17, %v1401_v0  ;;  %v111_v23 = vsel %vm77_vm2, %v107_v18, %v1401_v0  ;;  %v98_v29 = vsel %vm77_vm2, %v94_v19, %v1401_v0  ;;  %v135_v30 = vsel %vm77_vm2, %v131_v20, %v1401_v0  ;;  %v469_v19 = vld [vmem:[#allocation8 + $0xb0] sm:$0xff] }
  0x1b   :  { %79 = vrot.lane.b32.xlu0 %v78_v22, %s1376_s0  ;;  %112 = vrot.lane.b32.xlu1 %v111_v23, %s1376_s0  ;;  %v152_v31 = vrot.slane %v151_v26, 6  ;;  %v165_v32 = vrot.slane %v164_v27, 6  ;;  %v188_v33 = vsel %vm72_vm1, %v186_v24, %v1401_v0  ;;  %v209_v34 = vsel %vm72_vm1, %v207_v25, %v186_v24  ;;  %v491_v27 = vld [vmem:[#allocation8 + $0xb8] sm:$0xff] }
  0x1c   :  { %v244_v35 = vsel %vm70_vm0, %v237_v28, %v1401_v0  ;;  %v189_v39 = vrot.slane %v188_v33, 6  ;;  %v210_v40 = vrot.slane %v209_v34, 6  ;;  %v222_v41 = vsel %vm72_vm1, %v1401_v0, %v207_v25 }
  0x1d   :  { %v156_v37 = vsel %vm77_vm2, %v152_v31, %v1401_v0  ;;  %v169_v38 = vsel %vm77_vm2, %v165_v32, %v1401_v0  ;;  %v246_v42 = vsel %vm72_vm1, %v244_v35, %v1401_v0  ;;  %v265_v43 = vsel %vm70_vm0, %v259_v36, %v1401_v0 }
  0x1e   :  { %v193_v46 = vsel %vm77_vm2, %v189_v39, %v1401_v0  ;;  %v214_v47 = vsel %vm77_vm2, %v210_v40, %v1401_v0  ;;  %v223_v48 = vrot.slane %v222_v41, 6  ;;  %v247_v49 = vrot.slane %v246_v42, 6 }
  0x1f   :  { %99 = vrot.lane.b32.xlu0 %v98_v29, %s1376_s0  ;;  %136 = vrot.lane.b32.xlu1 %v135_v30, %s1376_s0  ;;  %v267_v50 = vsel %vm72_vm1, %v265_v43, %v244_v35  ;;  %v280_v51 = vsel %vm72_vm1, %v1401_v0, %v265_v43  ;;  %v302_v52 = vsel %vm70_vm0, %v295_v44, %v1401_v0 }
  0x20   :  { %v323_v53 = vsel %vm70_vm0, %v317_v45, %v1401_v0  ;;  %v227_v55 = vsel %vm77_vm2, %v223_v48, %v1401_v0  ;;  %v251_v56 = vsel %vm77_vm2, %v247_v49, %v1401_v0  ;;  %v268_v57 = vrot.slane %v267_v50, 6 }
  0x21   :  { %v281_v58 = vrot.slane %v280_v51, 6  ;;  %v304_v59 = vsel %vm72_vm1, %v302_v52, %v1401_v0  ;;  %v325_v60 = vsel %vm72_vm1, %v323_v53, %v302_v52  ;;  %v360_v61 = vsel %vm70_vm0, %v353_v54, %v1401_v0 }
  0x22   :  { %v272_v63 = vsel %vm77_vm2, %v268_v57, %v1401_v0  ;;  %v305_v4 = vrot.slane %v304_v59, 6  ;;  %v326_v5 = vrot.slane %v325_v60, 6  ;;  %v338_v6 = vsel %vm72_vm1, %v1401_v0, %v323_v53 }
  0x23   :  { %157 = vrot.lane.b32.xlu0 %v156_v37, %s1376_s0  ;;  %170 = vrot.lane.b32.xlu1 %v169_v38, %s1376_s0  ;;  %v285_v1 = vsel %vm77_vm2, %v281_v58, %v1401_v0  ;;  %v362_v7 = vsel %vm72_vm1, %v360_v61, %v1401_v0  ;;  %v381_v8 = vsel %vm70_vm0, %v375_v62, %v1401_v0  ;;  %v339_v13 = vrot.slane %v338_v6, 6 }
  0x24   :  { %v309_v11 = vsel %vm77_vm2, %v305_v4, %v1401_v0  ;;  %v330_v12 = vsel %vm77_vm2, %v326_v5, %v1401_v0  ;;  %v363_v14 = vrot.slane %v362_v7, 6  ;;  %v383_v15 = vsel %vm72_vm1, %v381_v8, %v360_v61 }
  0x25   :  { %v396_v16 = vsel %vm72_vm1, %v1401_v0, %v381_v8  ;;  %v418_v17 = vsel %vm70_vm0, %v411_v9, %v1401_v0  ;;  %v439_v18 = vsel %vm70_vm0, %v433_v10, %v1401_v0  ;;  %v343_v20 = vsel %vm77_vm2, %v339_v13, %v1401_v0 }
  0x26   :  { %v367_v21 = vsel %vm77_vm2, %v363_v14, %v1401_v0  ;;  %v384_v22 = vrot.slane %v383_v15, 6  ;;  %v397_v23 = vrot.slane %v396_v16, 6  ;;  %v420_v24 = vsel %vm72_vm1, %v418_v17, %v1401_v0 }
  0x27   :  { %194 = vrot.lane.b32.xlu0 %v193_v46, %s1376_s0  ;;  %215 = vrot.lane.b32.xlu1 %v214_v47, %s1376_s0  ;;  %v441_v25 = vsel %vm72_vm1, %v439_v18, %v418_v17  ;;  %v476_v26 = vsel %vm70_vm0, %v469_v19, %v1401_v0  ;;  %v421_v30 = vrot.slane %v420_v24, 6  ;;  %v454_v32 = vsel %vm72_vm1, %v1401_v0, %v439_v18 }
  0x28   :  { %v388_v28 = vsel %vm77_vm2, %v384_v22, %v1401_v0  ;;  %v401_v29 = vsel %vm77_vm2, %v397_v23, %v1401_v0  ;;  %v442_v31 = vrot.slane %v441_v25, 6  ;;  %v478_v33 = vsel %vm72_vm1, %v476_v26, %v1401_v0 }
  0x29   :  { %v497_v34 = vsel %vm70_vm0, %v491_v27, %v1401_v0  ;;  %v425_v35 = vsel %vm77_vm2, %v421_v30, %v1401_v0  ;;  %v455_v37 = vrot.slane %v454_v32, 6  ;;  %v479_v38 = vrot.slane %v478_v33, 6 }
  0x2a   :  { %v446_v36 = vsel %vm77_vm2, %v442_v31, %v1401_v0  ;;  %v499_v39 = vsel %vm72_vm1, %v497_v34, %v476_v26  ;;  %v512_v3 = vsel %vm72_vm1, %v1401_v0, %v497_v34 }
  0x2b   :  { %228 = vrot.lane.b32.xlu0 %v227_v55, %s1376_s0  ;;  %252 = vrot.lane.b32.xlu1 %v251_v56, %s1376_s0  ;;  %v459_v40 = vsel %vm77_vm2, %v455_v37, %v1401_v0  ;;  %v483_v41 = vsel %vm77_vm2, %v479_v38, %v1401_v0  ;;  %v500_v42 = vrot.slane %v499_v39, 6  ;;  %v513_v43 = vrot.slane %v512_v3, 6 }
  0x2d   :  { %v504_v44 = vsel %vm77_vm2, %v500_v42, %v1401_v0  ;;  %v517_v45 = vsel %vm77_vm2, %v513_v43, %v1401_v0 }
  0x2f   :  { %273 = vrot.lane.b32.xlu0 %v272_v63, %s1376_s0  ;;  %286 = vrot.lane.b32.xlu1 %v285_v1, %s1376_s0 }
  0x33   :  { %310 = vrot.lane.b32.xlu0 %v309_v11, %s1376_s0  ;;  %331 = vrot.lane.b32.xlu1 %v330_v12, %s1376_s0 }
  0x37   :  { %344 = vrot.lane.b32.xlu0 %v343_v20, %s1376_s0  ;;  %368 = vrot.lane.b32.xlu1 %v367_v21, %s1376_s0 }
  0x3b   :  { %389 = vrot.lane.b32.xlu0 %v388_v28, %s1376_s0  ;;  %402 = vrot.lane.b32.xlu1 %v401_v29, %s1376_s0 }
  0x3f   :  { %426 = vrot.lane.b32.xlu0 %v425_v35, %s1376_s0  ;;  %447 = vrot.lane.b32.xlu1 %v446_v36, %s1376_s0 }
  0x43   :  { %460 = vrot.lane.b32.xlu0 %v459_v40, %s1376_s0  ;;  %484 = vrot.lane.b32.xlu1 %v483_v41, %s1376_s0 }
  0x47   :  { %505 = vrot.lane.b32.xlu0 %v504_v44, %s1376_s0  ;;  %518 = vrot.lane.b32.xlu1 %v517_v45, %s1376_s0 }
  0x8d   :  { %v1597_v46 = vpop.permute.xlu0 %79  ;;  %v113_v47 = vpop.permute.xlu1 %112 }
  0x8e   :  { %117 = vst [vmem:[#allocation14 + $0x10] sm:$0xff] %v113_v47  ;;  %572 = vrot.lane.b32.xlu0 %v1597_v46, %s1377_s24  ;;  %v932_v15 = vmul.f32 0.40261996, %v1597_v46 }
  0x91   :  { %v1601_v48 = vpop.permute.xlu0 %99  ;;  %v1603_v49 = vpop.permute.xlu1 %136 }
  0x92   :  { %574 = vrot.lane.b32.xlu1 %v1601_v48, %s1377_s24  ;;  %v933_v16 = vmul.f32 0.40261996, %v1601_v48  ;;  %v935_v18 = vmul.f32 0.40261996, %v1603_v49 }
  0x95   :  { %v1607_v0 = vpop.permute.xlu0 %157  ;;  %v171_v2 = vpop.permute.xlu1 %170  ;;  %v1609_v50 = vld [vmem:[#allocation14 + $0x10] sm:$0xf] }
  0x96   :  { %175 = vst [vmem:[#allocation14 + $0x28] sm:$0xff] %v171_v2  ;;  %576 = vrot.lane.b32.xlu0 %v1609_v50, %s1377_s24  ;;  %578 = vrot.lane.b32.xlu1 %v1603_v49, %s1377_s24  ;;  %v934_v17 = vmul.f32 0.40261996, %v1609_v50  ;;  %v936_v19 = vmul.f32 0.40261996, %v1607_v0 }
  0x99   :  { %v1615_v51 = vpop.permute.xlu0 %194  ;;  %v1617_v52 = vpop.permute.xlu1 %215 }
  0x9a   :  { %580 = vrot.lane.b32.xlu0 %v1607_v0, %s1377_s24  ;;  %v938_v21 = vmul.f32 0.40261996, %v1615_v51  ;;  %v939_v22 = vmul.f32 0.40261996, %v1617_v52 }
  0x9d   :  { %v229_v53 = vpop.permute.xlu0 %228  ;;  %v1621_v54 = vpop.permute.xlu1 %252  ;;  %v1623_v55 = vld [vmem:[#allocation14 + $0x28] sm:$0xf] }
  0x9e   :  { %233 = vst [vmem:[#allocation14 + $0x88] sm:$0xff] %v229_v53  ;;  %582 = vrot.lane.b32.xlu1 %v1623_v55, %s1377_s24  ;;  %584 = vrot.lane.b32.xlu0 %v1615_v51, %s1377_s24  ;;  %v937_v20 = vmul.f32 0.40261996, %v1623_v55  ;;  %v941_v25 = vmul.f32 0.40261996, %v1621_v54 }
  0xa1   :  { %v1629_v56 = vpop.permute.xlu0 %273  ;;  %v287_v57 = vpop.permute.xlu1 %286 }
  0xa2   :  { %291 = vst [vmem:[#allocation14 + $0x98] sm:$0xff] %v287_v57  ;;  %586 = vrot.lane.b32.xlu1 %v1617_v52, %s1377_s24  ;;  %v942_v27 = vmul.f32 0.40261996, %v1629_v56 }
  0xa5   :  { %v1633_v58 = vpop.permute.xlu0 %310  ;;  %v1635_v59 = vld [vmem:[#allocation14 + $0x88] sm:$0xf]  ;;  %v1637_v60 = vpop.permute.xlu1 %331 }
  0xa6   :  { %588 = vrot.lane.b32.xlu0 %v1635_v59, %s1377_s24  ;;  %590 = vrot.lane.b32.xlu1 %v1621_v54, %s1377_s24  ;;  %v940_v23 = vmul.f32 0.40261996, %v1635_v59  ;;  %v944_v30 = vmul.f32 0.40261996, %v1633_v58  ;;  %v945_v32 = vmul.f32 0.40261996, %v1637_v60 }
  0xa9   :  { %v345_v61 = vpop.permute.xlu0 %344  ;;  %v1643_v62 = vpop.permute.xlu1 %368  ;;  %v1645_v63 = vld [vmem:[#allocation14 + $0x98] sm:$0xf] }
  0xaa   :  { %349 = vst [vmem:[#allocation14 + $0x70] sm:$0xff] %v345_v61  ;;  %592 = vrot.lane.b32.xlu0 %v1629_v56, %s1377_s24  ;;  %594 = vrot.lane.b32.xlu1 %v1645_v63, %s1377_s24  ;;  %v943_v29 = vmul.f32 0.40261996, %v1645_v63  ;;  %v947_v36 = vmul.f32 0.40261996, %v1643_v62 }
  0xad   :  { %v1651_v1 = vpop.permute.xlu0 %389  ;;  %v403_v4 = vpop.permute.xlu1 %402 }
  0xae   :  { %596 = vrot.lane.b32.xlu0 %v1633_v58, %s1377_s24  ;;  %407 = vst [vmem:[#allocation14 + $0x68] sm:$0xff] %v403_v4  ;;  %598 = vrot.lane.b32.xlu1 %v1637_v60, %s1377_s24  ;;  %v948_v38 = vmul.f32 0.40261996, %v1651_v1 }
  0xb1   :  { %v1657_v5 = vpop.permute.xlu0 %426  ;;  %v1659_v6 = vld [vmem:[#allocation14 + $0x70] sm:$0xf]  ;;  %v1661_v7 = vpop.permute.xlu1 %447 }
  0xb2   :  { %2056 = vst [vmem:[#allocation17_spill] sm:$0xff] %v1661_v7  ;;  %600 = vrot.lane.b32.xlu0 %v1659_v6, %s1377_s24  ;;  %602 = vrot.lane.b32.xlu1 %v1643_v62, %s1377_s24  ;;  %v946_v34 = vmul.f32 0.40261996, %v1659_v6  ;;  %v950_v41 = vmul.f32 0.40261996, %v1657_v5 }
  0xb3   :  { %v951_v43 = vmul.f32 0.40261996, %v1661_v7 }
  0xb5   :  { %v461_v8 = vpop.permute.xlu0 %460  ;;  %v1667_v9 = vpop.permute.xlu1 %484  ;;  %v1669_v10 = vld [vmem:[#allocation14 + $0x68] sm:$0xf] }
  0xb6   :  { %2057 = vst [vmem:[#allocation18_spill] sm:$0xff] %v1667_v9  ;;  %465 = vst [vmem:[#allocation14 + $0x80] sm:$0xff] %v461_v8  ;;  %604 = vrot.lane.b32.xlu0 %v1651_v1, %s1377_s24  ;;  %606 = vrot.lane.b32.xlu1 %v1669_v10, %s1377_s24  ;;  %v949_v3 = vmul.f32 0.40261996, %v1669_v10  ;;  %v953_v2 = vmul.f32 0.40261996, %v1667_v9 }
  0xb9   :  { %v1675_v11 = vpop.permute.xlu0 %505  ;;  %v519_v12 = vpop.permute.xlu1 %518 }
  0xba   :  { %2058 = vst [vmem:[#allocation19_spill] sm:$0xff] %v1675_v11  ;;  %608 = vrot.lane.b32.xlu0 %v1657_v5, %s1377_s24  ;;  %523 = vst [vmem:[#allocation14 + $0x8] sm:$0xff] %v519_v12  ;;  %610 = vrot.lane.b32.xlu1 %v1661_v7, %s1377_s24 }
  0xbd   :  { %v1681_v13 = vld [vmem:[#allocation14 + $0x80] sm:$0xf] }
  0xbe   :  { %2059 = vst [vmem:[#allocation20_spill] sm:$0xff] %v1681_v13  ;;  %612 = vrot.lane.b32.xlu0 %v1681_v13, %s1377_s24  ;;  %614 = vrot.lane.b32.xlu1 %v1667_v9, %s1377_s24  ;;  %v952_v45 = vmul.f32 0.40261996, %v1681_v13 }
  0xc1   :  { %v1687_v14 = vld [vmem:[#allocation14 + $0x8] sm:$0xf] }
  0xc2   :  { %2060 = vst [vmem:[#allocation21_spill] sm:$0xff] %v1687_v14  ;;  %616 = vrot.lane.b32.xlu0 %v1675_v11, %s1377_s24  ;;  %618 = vrot.lane.b32.xlu1 %v1687_v14, %s1377_s24 }
  0xc6   :  { %692 = vrot.lane.b32.xlu0 %v1597_v46, %s1378_s25  ;;  %694 = vrot.lane.b32.xlu1 %v1601_v48, %s1378_s25 }
  0xca   :  { %696 = vrot.lane.b32.xlu0 %v1609_v50, %s1378_s25  ;;  %698 = vrot.lane.b32.xlu1 %v1603_v49, %s1378_s25 }
  0xce   :  { %700 = vrot.lane.b32.xlu0 %v1607_v0, %s1378_s25  ;;  %702 = vrot.lane.b32.xlu1 %v1623_v55, %s1378_s25 }
  0xd2   :  { %704 = vrot.lane.b32.xlu0 %v1615_v51, %s1378_s25  ;;  %706 = vrot.lane.b32.xlu1 %v1617_v52, %s1378_s25 }
  0xd6   :  { %708 = vrot.lane.b32.xlu0 %v1635_v59, %s1378_s25  ;;  %710 = vrot.lane.b32.xlu1 %v1621_v54, %s1378_s25 }
  0xda   :  { %712 = vrot.lane.b32.xlu0 %v1629_v56, %s1378_s25  ;;  %714 = vrot.lane.b32.xlu1 %v1645_v63, %s1378_s25 }
  0xde   :  { %716 = vrot.lane.b32.xlu0 %v1633_v58, %s1378_s25  ;;  %718 = vrot.lane.b32.xlu1 %v1637_v60, %s1378_s25 }
  0xe2   :  { %720 = vrot.lane.b32.xlu0 %v1659_v6, %s1378_s25  ;;  %722 = vrot.lane.b32.xlu1 %v1643_v62, %s1378_s25 }
  0xe6   :  { %724 = vrot.lane.b32.xlu0 %v1651_v1, %s1378_s25  ;;  %726 = vrot.lane.b32.xlu1 %v1669_v10, %s1378_s25 }
  0xea   :  { %728 = vrot.lane.b32.xlu0 %v1657_v5, %s1378_s25  ;;  %730 = vrot.lane.b32.xlu1 %v1661_v7, %s1378_s25 }
  0xee   :  { %732 = vrot.lane.b32.xlu0 %v1681_v13, %s1378_s25  ;;  %734 = vrot.lane.b32.xlu1 %v1667_v9, %s1378_s25 }
  0xf2   :  { %736 = vrot.lane.b32.xlu0 %v1675_v11, %s1378_s25  ;;  %738 = vrot.lane.b32.xlu1 %v1687_v14, %s1378_s25 }
  0xf6   :  { %980 = vrot.lane.b32.xlu0 %v932_v15, %s1378_s25  ;;  %982 = vrot.lane.b32.xlu1 %v933_v16, %s1378_s25 }
  0xfa   :  { %984 = vrot.lane.b32.xlu0 %v934_v17, %s1378_s25  ;;  %986 = vrot.lane.b32.xlu1 %v935_v18, %s1378_s25 }
  0xfe   :  { %988 = vrot.lane.b32.xlu0 %v936_v19, %s1378_s25  ;;  %990 = vrot.lane.b32.xlu1 %v937_v20, %s1378_s25 }
 0x100   :  { %v1758_v24 = vpop.permute.xlu0 %572 }
 0x102   :  { %992 = vrot.lane.b32.xlu0 %v938_v21, %s1378_s25  ;;  %994 = vrot.lane.b32.xlu1 %v939_v22, %s1378_s25 }
 0x104   :  { %v1763_v26 = vpop.permute.xlu1 %574 }
 0x106   :  { %996 = vrot.lane.b32.xlu0 %v940_v23, %s1378_s25  ;;  %998 = vrot.lane.b32.xlu1 %v941_v25, %s1378_s25 }
 0x108   :  { %v1766_v28 = vpop.permute.xlu0 %576  ;;  %v1772_v31 = vpop.permute.xlu1 %578 }
 0x10a   :  { %1000 = vrot.lane.b32.xlu0 %v942_v27, %s1378_s25  ;;  %1002 = vrot.lane.b32.xlu1 %v943_v29, %s1378_s25 }
 0x10c   :  { %v1776_v33 = vpop.permute.xlu0 %580 }
 0x10e   :  { %1004 = vrot.lane.b32.xlu0 %v944_v30, %s1378_s25  ;;  %1006 = vrot.lane.b32.xlu1 %v945_v32, %s1378_s25 }
 0x110   :  { %v1780_v35 = vpop.permute.xlu1 %582  ;;  %v1785_v37 = vpop.permute.xlu0 %584 }
 0x112   :  { %1008 = vrot.lane.b32.xlu0 %v946_v34, %s1378_s25  ;;  %1010 = vrot.lane.b32.xlu1 %v947_v36, %s1378_s25 }
 0x114   :  { %v1788_v39 = vpop.permute.xlu1 %586 }
 0x116   :  { %1012 = vrot.lane.b32.xlu0 %v948_v38, %s1378_s25  ;;  %1014 = vrot.lane.b32.xlu1 %v949_v3, %s1378_s25 }
 0x118   :  { %v1793_v40 = vpop.permute.xlu0 %588  ;;  %v1796_v42 = vpop.permute.xlu1 %590 }
 0x11a   :  { %1016 = vrot.lane.b32.xlu0 %v950_v41, %s1378_s25  ;;  %1018 = vrot.lane.b32.xlu1 %v951_v43, %s1378_s25 }
 0x11c   :  { %v1801_v44 = vpop.permute.xlu0 %592  ;;  %v1804_v47 = vpop.permute.xlu1 %594 }
 0x11e   :  { %1020 = vrot.lane.b32.xlu0 %v952_v45, %s1378_s25  ;;  %1022 = vrot.lane.b32.xlu1 %v953_v2, %s1378_s25 }
 0x120   :  { %v1809_v53 = vpop.permute.xlu0 %596  ;;  %v1811_v57 = vpop.permute.xlu1 %598 }
 0x124   :  { %v1813_v61 = vpop.permute.xlu0 %600  ;;  %v1815_v4 = vpop.permute.xlu1 %602 }
 0x128   :  { %v1817_v8 = vpop.permute.xlu0 %604  ;;  %v1819_v12 = vpop.permute.xlu1 %606 }
 0x12c   :  { %v1821_v15 = vpop.permute.xlu0 %608  ;;  %v1823_v16 = vpop.permute.xlu1 %610 }
 0x12d   :  { %2061 = vst [vmem:[#allocation22_spill] sm:$0xff] %v1823_v16 }
 0x130   :  { %v1825_v17 = vpop.permute.xlu0 %612  ;;  %v1827_v18 = vpop.permute.xlu1 %614 }
 0x131   :  { %2062 = vst [vmem:[#allocation23_spill] sm:$0xff] %v1825_v17  ;;  %2063 = vst [vmem:[#allocation24_spill] sm:$0xff] %v1827_v18  ;;  %v644_v18 = vadd.f32 %v1758_v24, %v1597_v46 }
 0x134   :  { %v1829_v19 = vpop.permute.xlu0 %616  ;;  %v1831_v20 = vpop.permute.xlu1 %618 }
 0x135   :  { %2064 = vst [vmem:[#allocation25_spill] sm:$0xff] %v1829_v19  ;;  %2065 = vst [vmem:[#allocation26_spill] sm:$0xff] %v1831_v20 }
 0x138   :  { %v693_v21 = vpop.permute.xlu0 %692  ;;  %v695_v22 = vpop.permute.xlu1 %694 }
 0x139   :  { %v764_v23 = vadd.f32 %v693_v21, %v1597_v46  ;;  %v765_v25 = vadd.f32 %v695_v22, %v1601_v48 }
 0x13b   :  { %v788_v27 = vmul.f32 0.24420135, %v764_v23  ;;  %v789_v29 = vmul.f32 0.24420135, %v765_v25 }
 0x13c   :  { %v697_v30 = vpop.permute.xlu0 %696  ;;  %v699_v32 = vpop.permute.xlu1 %698 }
 0x13d   :  { %v766_v34 = vadd.f32 %v697_v30, %v1609_v50  ;;  %836 = vrot.lane.b32.xlu0 %v788_v27, %s1379_s26  ;;  %v767_v36 = vadd.f32 %v699_v32, %v1603_v49  ;;  %838 = vrot.lane.b32.xlu1 %v789_v29, %s1379_s26 }
 0x13f   :  { %v790_v38 = vmul.f32 0.24420135, %v766_v34  ;;  %v791_v3 = vmul.f32 0.24420135, %v767_v36 }
 0x140   :  { %v701_v41 = vpop.permute.xlu0 %700  ;;  %v703_v43 = vpop.permute.xlu1 %702 }
 0x141   :  { %v768_v45 = vadd.f32 %v701_v41, %v1607_v0  ;;  %840 = vrot.lane.b32.xlu0 %v790_v38, %s1379_s26  ;;  %v769_v2 = vadd.f32 %v703_v43, %v1623_v55  ;;  %842 = vrot.lane.b32.xlu1 %v791_v3, %s1379_s26 }
 0x143   :  { %v792_v21 = vmul.f32 0.24420135, %v768_v45  ;;  %v793_v22 = vmul.f32 0.24420135, %v769_v2 }
 0x144   :  { %v705_v23 = vpop.permute.xlu0 %704  ;;  %v707_v25 = vpop.permute.xlu1 %706 }
 0x145   :  { %v770_v27 = vadd.f32 %v705_v23, %v1615_v51  ;;  %844 = vrot.lane.b32.xlu0 %v792_v21, %s1379_s26  ;;  %v771_v29 = vadd.f32 %v707_v25, %v1617_v52  ;;  %846 = vrot.lane.b32.xlu1 %v793_v22, %s1379_s26 }
 0x147   :  { %v794_v30 = vmul.f32 0.24420135, %v770_v27  ;;  %v795_v32 = vmul.f32 0.24420135, %v771_v29 }
 0x148   :  { %v709_v34 = vpop.permute.xlu0 %708  ;;  %v711_v36 = vpop.permute.xlu1 %710 }
 0x149   :  { %v772_v38 = vadd.f32 %v709_v34, %v1635_v59  ;;  %848 = vrot.lane.b32.xlu0 %v794_v30, %s1379_s26  ;;  %v773_v3 = vadd.f32 %v711_v36, %v1621_v54  ;;  %850 = vrot.lane.b32.xlu1 %v795_v32, %s1379_s26 }
 0x14b   :  { %v796_v41 = vmul.f32 0.24420135, %v772_v38  ;;  %v797_v43 = vmul.f32 0.24420135, %v773_v3 }
 0x14c   :  { %v713_v45 = vpop.permute.xlu0 %712  ;;  %v715_v2 = vpop.permute.xlu1 %714 }
 0x14d   :  { %v774_v21 = vadd.f32 %v713_v45, %v1629_v56  ;;  %852 = vrot.lane.b32.xlu0 %v796_v41, %s1379_s26  ;;  %v775_v22 = vadd.f32 %v715_v2, %v1645_v63  ;;  %854 = vrot.lane.b32.xlu1 %v797_v43, %s1379_s26 }
 0x14f   :  { %v798_v23 = vmul.f32 0.24420135, %v774_v21  ;;  %v799_v25 = vmul.f32 0.24420135, %v775_v22 }
 0x150   :  { %v717_v27 = vpop.permute.xlu0 %716  ;;  %v719_v29 = vpop.permute.xlu1 %718 }
 0x151   :  { %v776_v30 = vadd.f32 %v717_v27, %v1633_v58  ;;  %856 = vrot.lane.b32.xlu0 %v798_v23, %s1379_s26  ;;  %v777_v32 = vadd.f32 %v719_v29, %v1637_v60  ;;  %858 = vrot.lane.b32.xlu1 %v799_v25, %s1379_s26 }
 0x153   :  { %v800_v34 = vmul.f32 0.24420135, %v776_v30  ;;  %v801_v36 = vmul.f32 0.24420135, %v777_v32 }
 0x154   :  { %v721_v38 = vpop.permute.xlu0 %720  ;;  %v723_v3 = vpop.permute.xlu1 %722 }
 0x155   :  { %v778_v41 = vadd.f32 %v721_v38, %v1659_v6  ;;  %860 = vrot.lane.b32.xlu0 %v800_v34, %s1379_s26  ;;  %v779_v43 = vadd.f32 %v723_v3, %v1643_v62  ;;  %862 = vrot.lane.b32.xlu1 %v801_v36, %s1379_s26 }
 0x157   :  { %v802_v45 = vmul.f32 0.24420135, %v778_v41  ;;  %v803_v2 = vmul.f32 0.24420135, %v779_v43 }
 0x158   :  { %v725_v21 = vpop.permute.xlu0 %724  ;;  %v727_v22 = vpop.permute.xlu1 %726 }
 0x159   :  { %v780_v23 = vadd.f32 %v725_v21, %v1651_v1  ;;  %864 = vrot.lane.b32.xlu0 %v802_v45, %s1379_s26  ;;  %v781_v25 = vadd.f32 %v727_v22, %v1669_v10  ;;  %866 = vrot.lane.b32.xlu1 %v803_v2, %s1379_s26 }
 0x15b   :  { %v804_v27 = vmul.f32 0.24420135, %v780_v23  ;;  %v805_v29 = vmul.f32 0.24420135, %v781_v25 }
 0x15c   :  { %v729_v30 = vpop.permute.xlu0 %728  ;;  %v731_v32 = vpop.permute.xlu1 %730 }
 0x15d   :  { %v782_v34 = vadd.f32 %v729_v30, %v1657_v5  ;;  %868 = vrot.lane.b32.xlu0 %v804_v27, %s1379_s26  ;;  %v783_v36 = vadd.f32 %v731_v32, %v1661_v7  ;;  %870 = vrot.lane.b32.xlu1 %v805_v29, %s1379_s26 }
 0x15f   :  { %v806_v38 = vmul.f32 0.24420135, %v782_v34  ;;  %v807_v3 = vmul.f32 0.24420135, %v783_v36  ;;  %v954_v34 = vmul.f32 0.40261996, %v1675_v11 }
 0x160   :  { %v733_v41 = vpop.permute.xlu0 %732  ;;  %v735_v43 = vpop.permute.xlu1 %734  ;;  %v955_v36 = vmul.f32 0.40261996, %v1687_v14 }
 0x161   :  { %v784_v45 = vadd.f32 %v733_v41, %v1681_v13  ;;  %872 = vrot.lane.b32.xlu0 %v806_v38, %s1379_s26  ;;  %v785_v2 = vadd.f32 %v735_v43, %v1667_v9  ;;  %874 = vrot.lane.b32.xlu1 %v807_v3, %s1379_s26  ;;  %v645_v9 = vadd.f32 %v1763_v26, %v1601_v48 }
 0x162   :  { %v648_v48 = vadd.f32 %v1776_v33, %v1607_v0  ;;  %v649_v26 = vadd.f32 %v1780_v35, %v1623_v55  ;;  %v651_v33 = vadd.f32 %v1788_v39, %v1617_v52  ;;  %v655_v39 = vadd.f32 %v1804_v47, %v1645_v63 }
 0x163   :  { %v808_v21 = vmul.f32 0.24420135, %v784_v45  ;;  %v809_v22 = vmul.f32 0.24420135, %v785_v2 }
 0x164   :  { %v737_v23 = vpop.permute.xlu0 %736  ;;  %v739_v25 = vpop.permute.xlu1 %738  ;;  %v673_v0 = vmul.f32 0.054488685, %v649_v26 }
 0x165   :  { %v786_v27 = vadd.f32 %v737_v23, %v1675_v11  ;;  %876 = vrot.lane.b32.xlu0 %v808_v21, %s1379_s26  ;;  %v787_v29 = vadd.f32 %v739_v25, %v1687_v14  ;;  %878 = vrot.lane.b32.xlu1 %v809_v22, %s1379_s26 }
 0x167   :  { %v810_v30 = vmul.f32 0.24420135, %v786_v27  ;;  %v811_v32 = vmul.f32 0.24420135, %v787_v29 }
 0x168   :  { %v981_v38 = vpop.permute.xlu0 %980  ;;  %v983_v3 = vpop.permute.xlu1 %982 }
 0x169   :  { %880 = vrot.lane.b32.xlu0 %v810_v30, %s1379_s26  ;;  %882 = vrot.lane.b32.xlu1 %v811_v32, %s1379_s26 }
 0x16c   :  { %v985_v41 = vpop.permute.xlu0 %984  ;;  %v987_v43 = vpop.permute.xlu1 %986 }
 0x16d   :  { %1024 = vrot.lane.b32.xlu0 %v954_v34, %s1378_s25  ;;  %1026 = vrot.lane.b32.xlu1 %v955_v36, %s1378_s25 }
 0x170   :  { %v1885_v45 = vpop.permute.xlu0 %988  ;;  %v1887_v2 = vpop.permute.xlu1 %990 }
 0x174   :  { %v1889_v21 = vpop.permute.xlu0 %992  ;;  %v1891_v22 = vpop.permute.xlu1 %994 }
 0x178   :  { %v1893_v23 = vpop.permute.xlu0 %996  ;;  %v1895_v25 = vpop.permute.xlu1 %998 }
 0x17c   :  { %v1897_v27 = vpop.permute.xlu0 %1000  ;;  %v1899_v29 = vpop.permute.xlu1 %1002 }
 0x180   :  { %v1901_v30 = vpop.permute.xlu0 %1004  ;;  %v1903_v32 = vpop.permute.xlu1 %1006 }
 0x184   :  { %v1905_v34 = vpop.permute.xlu0 %1008  ;;  %v1907_v36 = vpop.permute.xlu1 %1010 }
 0x185   :  { %2066 = vst [vmem:[#allocation27_spill] sm:$0xff] %v1905_v34  ;;  %2067 = vst [vmem:[#allocation28_spill] sm:$0xff] %v1907_v36  ;;  %v646_v36 = vadd.f32 %v1766_v28, %v1609_v50  ;;  %v669_v34 = vmul.f32 0.054488685, %v645_v9 }
 0x187   :  { %v670_v46 = vmul.f32 0.054488685, %v646_v36 }
 0x188   :  { %v1909_v20 = vpop.permute.xlu0 %1012  ;;  %v1911_v14 = vpop.permute.xlu1 %1014 }
 0x189   :  { %2068 = vst [vmem:[#allocation29_spill] sm:$0xff] %v1909_v20  ;;  %2069 = vst [vmem:[#allocation30_spill] sm:$0xff] %v1911_v14  ;;  %v668_v20 = vmul.f32 0.054488685, %v644_v18 }
 0x18c   :  { %v1913_v19 = vpop.permute.xlu0 %1016  ;;  %v1915_v11 = vpop.permute.xlu1 %1018 }
 0x18d   :  { %2070 = vst [vmem:[#allocation31_spill] sm:$0xff] %v1913_v19  ;;  %2071 = vst [vmem:[#allocation32_spill] sm:$0xff] %v1915_v11  ;;  %v647_v19 = vadd.f32 %v1772_v31, %v1603_v49  ;;  %v650_v31 = vadd.f32 %v1785_v37, %v1615_v51 }
 0x18f   :  { %v671_v24 = vmul.f32 0.054488685, %v647_v19  ;;  %v654_v19 = vadd.f32 %v1801_v44, %v1629_v56  ;;  %v674_v52 = vmul.f32 0.054488685, %v650_v31  ;;  %v658_v56 = vadd.f32 %v1813_v61, %v1659_v6 }
 0x190   :  { %v1921_v17 = vpop.permute.xlu0 %1020  ;;  %v1923_v13 = vpop.permute.xlu1 %1022 }
 0x191   :  { %2072 = vst [vmem:[#allocation33_spill] sm:$0xff] %v1923_v13  ;;  %v678_v47 = vmul.f32 0.054488685, %v654_v19  ;;  %v1963_v36 = vmul.f32 0.054488685, %v658_v56 }
 0x1af   :  { %v837_v14 = vpop.permute.xlu0 %836  ;;  %v839_v11 = vpop.permute.xlu1 %838 }
 0x1b0   :  { %v908_v16 = vadd.f32 %v837_v14, %v668_v20  ;;  %v909_v7 = vadd.f32 %v839_v11, %v669_v34  ;;  %v672_v11 = vmul.f32 0.054488685, %v648_v48 }
 0x1b2   :  { %v1052_v13 = vadd.f32 %v981_v38, %v908_v16  ;;  %v1053_v50 = vadd.f32 %v983_v3, %v909_v7  ;;  %v652_v7 = vadd.f32 %v1793_v40, %v1635_v59  ;;  %v656_v59 = vadd.f32 %v1809_v53, %v1633_v58 }
 0x1b3   :  { %v841_v28 = vpop.permute.xlu0 %840  ;;  %v843_v9 = vpop.permute.xlu1 %842  ;;  %v675_v40 = vmul.f32 0.054488685, %v651_v33 }
 0x1b4   :  { %1077 = vst.msk [vmem:[#allocation2] sm:$0xff] %vm1076_vm3, %v1052_v13  ;;  %1078 = vst.msk [vmem:[#allocation2 + $0x8] sm:$0xff] %vm1076_vm3, %v1053_v50  ;;  %v910_v49 = vadd.f32 %v841_v28, %v670_v46  ;;  %v911_v14 = vadd.f32 %v843_v9, %v671_v24  ;;  %v653_v13 = vadd.f32 %v1796_v42, %v1621_v54  ;;  %v676_v20 = vmul.f32 0.054488685, %v652_v7 }
 0x1b5   :  { %v657_v54 = vadd.f32 %v1811_v57, %v1637_v60  ;;  %v679_v57 = vmul.f32 0.054488685, %v655_v39  ;;  %v1959_v61 = vmul.f32 0.054488685, %v656_v59  ;;  %v659_v28 = vadd.f32 %v1815_v4, %v1643_v62 }
 0x1b6   :  { %v1054_v55 = vadd.f32 %v985_v41, %v910_v49  ;;  %v1055_v35 = vadd.f32 %v987_v43, %v911_v14  ;;  %v677_v38 = vmul.f32 0.054488685, %v653_v13  ;;  %v661_v62 = vadd.f32 %v1819_v12, %v1669_v10 }
 0x1b7   :  { %v845_v16 = vpop.permute.xlu0 %844  ;;  %v847_v18 = vpop.permute.xlu1 %846 }
 0x1b8   :  { %1080 = vst.msk [vmem:[#allocation2 + $0x10] sm:$0xf] %vm1079_vm4, %v1054_v55  ;;  %v912_v51 = vadd.f32 %v845_v16, %v672_v11  ;;  %v913_v37 = vadd.f32 %v847_v18, %v673_v0 }
 0x1b9   :  { %1081 = vst.msk [vmem:[#allocation2 + $0x18] sm:$0xff] %vm1076_vm3, %v1055_v35 }
 0x1ba   :  { %v1056_v42 = vadd.f32 %v1885_v45, %v912_v51  ;;  %v1057_v44 = vadd.f32 %v1887_v2, %v913_v37  ;;  %v1961_v45 = vmul.f32 0.054488685, %v657_v54 }
 0x1bb   :  { %v1102_v3 = vld [vmem:[#allocation2] sm:$0xff]  ;;  %v849_v43 = vpop.permute.xlu0 %848  ;;  %v851_v63 = vpop.permute.xlu1 %850  ;;  %v1103_v46 = vld [vmem:[#allocation2 + $0x8] sm:$0xff] }
 0x1bc   :  { %v1118_v41 = vld [vmem:[#allocation2 + $0x4] sm:$0xff]  ;;  %1082 = vst.msk [vmem:[#allocation2 + $0x20] sm:$0xff] %vm1076_vm3, %v1056_v42  ;;  %v914_v60 = vadd.f32 %v849_v43, %v674_v52  ;;  %v915_v6 = vadd.f32 %v851_v63, %v675_v40  ;;  %v1982_v63 = vmul.f32 0.054488685, %v661_v62 }
 0x1bd   :  { %v1134_v34 = vadd.f32 %v1118_v41, %v1102_v3  ;;  %v1166_v58 = vld [vmem:[#allocation2 + $0x1] sm:$0xff]  ;;  %1083 = vst.msk [vmem:[#allocation2 + $0x28] sm:$0xf] %vm1079_vm4, %v1057_v44 }
 0x1be   :  { %v1182_v53 = vld [vmem:[#allocation2 + $0x3] sm:$0xff]  ;;  %v1058_v26 = vadd.f32 %v1889_v21, %v914_v60  ;;  %v1059_v50 = vadd.f32 %v1891_v22, %v915_v6  ;;  %v660_v22 = vadd.f32 %v1817_v8, %v1651_v1 }
 0x1bf   :  { %v1198_v2 = vadd.f32 %v1182_v53, %v1166_v58  ;;  %v1150_v48 = vmul.f32 0.054488685, %v1134_v34  ;;  %v1246_v24 = vld [vmem:[#allocation2 + $0x2] sm:$0xff]  ;;  %v1119_v49 = vld [vmem:[#allocation2 + $0xc] sm:$0xff]  ;;  %v853_v31 = vpop.permute.xlu0 %852  ;;  %v855_v0 = vpop.permute.xlu1 %854 }
 0x1c0   :  { %v1167_v14 = vld [vmem:[#allocation2 + $0x9] sm:$0xff]  ;;  %v1135_v33 = vadd.f32 %v1119_v49, %v1103_v46  ;;  %1084 = vst.msk [vmem:[#allocation2 + $0x30] sm:$0xff] %vm1076_vm3, %v1058_v26  ;;  %1085 = vst.msk [vmem:[#allocation2 + $0x38] sm:$0xff] %vm1076_vm3, %v1059_v50  ;;  %v916_v7 = vadd.f32 %v853_v31, %v676_v20  ;;  %v917_v21 = vadd.f32 %v855_v0, %v677_v38  ;;  %v1262_v13 = vmul.f32 0.40261996, %v1246_v24  ;;  %v1104_v19 = vld [vmem:[#allocation2 + $0x18] sm:$0xff] }
 0x1c1   :  { %v1214_v9 = vmul.f32 0.24420135, %v1198_v2  ;;  %v1183_v11 = vld [vmem:[#allocation2 + $0xb] sm:$0xff]  ;;  %v1979_v38 = vmul.f32 0.054488685, %v660_v22  ;;  %v662_v50 = vadd.f32 %v1821_v15, %v1657_v5  ;;  %v2073_v22 = vld [vmem:[#allocation17_spill] sm:$0xff] }
 0x1c2   :  { %v1199_v55 = vadd.f32 %v1183_v11, %v1167_v14  ;;  %v1247_v35 = vld [vmem:[#allocation2 + $0xa] sm:$0xff]  ;;  %v1151_v16 = vmul.f32 0.054488685, %v1135_v33  ;;  %v1060_v51 = vadd.f32 %v1893_v23, %v916_v7  ;;  %v1061_v37 = vadd.f32 %v1895_v25, %v917_v21 }
 0x1c3   :  { %v1230_v4 = vadd.f32 %v1214_v9, %v1150_v48  ;;  %v1263_v39 = vmul.f32 0.40261996, %v1247_v35  ;;  %v1105_v59 = vld [vmem:[#allocation2 + $0x20] sm:$0xff]  ;;  %v857_v56 = vpop.permute.xlu0 %856  ;;  %v859_v42 = vpop.permute.xlu1 %858  ;;  %v683_v23 = vmul.f32 0.054488685, %v659_v28 }
 0x1c4   :  { %v1215_v18 = vmul.f32 0.24420135, %v1199_v55  ;;  %v1120_v54 = vld [vmem:[#allocation2 + $0x1c] sm:$0xff]  ;;  %v1121_v10 = vld [vmem:[#allocation2 + $0x24] sm:$0xff]  ;;  %1086 = vst.msk [vmem:[#allocation2 + $0x40] sm:$0xf] %vm1079_vm4, %v1060_v51  ;;  %v918_v12 = vadd.f32 %v857_v56, %v678_v47  ;;  %v919_v20 = vadd.f32 %v859_v42, %v679_v57 }
 0x1c5   :  { %v1278_v52 = vadd.f32 %v1262_v13, %v1230_v4  ;;  %v1168_v40 = vld [vmem:[#allocation2 + $0x19] sm:$0xff]  ;;  %v1136_v8 = vadd.f32 %v1120_v54, %v1104_v19  ;;  %1087 = vst.msk [vmem:[#allocation2 + $0x48] sm:$0xff] %vm1076_vm3, %v1061_v37  ;;  %v1137_v3 = vadd.f32 %v1121_v10, %v1105_v59  ;;  %v1169_v41 = vld [vmem:[#allocation2 + $0x21] sm:$0xff]  ;;  %v2076_v54 = vld [vmem:[#allocation23_spill] sm:$0xff] }
 0x1c6   :  { %v1231_v1 = vadd.f32 %v1215_v18, %v1151_v16  ;;  %v1184_v44 = vld [vmem:[#allocation2 + $0x1b] sm:$0xff]  ;;  %v1185_v43 = vld [vmem:[#allocation2 + $0x23] sm:$0xff]  ;;  %v1062_v57 = vadd.f32 %v1897_v27, %v918_v12  ;;  %v1063_v48 = vadd.f32 %v1899_v29, %v919_v20 }
 0x1c7   :  { %1294 = vst.msk [vmem:[#allocation11] sm:$0xff] %vm1076_vm3, %v1278_v52  ;;  %v1200_v25 = vadd.f32 %v1184_v44, %v1168_v40  ;;  %v1152_v58 = vmul.f32 0.054488685, %v1136_v8  ;;  %v1248_v53 = vld [vmem:[#allocation2 + $0x1a] sm:$0xff]  ;;  %v1201_v60 = vadd.f32 %v1185_v43, %v1169_v41  ;;  %v1153_v2 = vmul.f32 0.054488685, %v1137_v3  ;;  %v861_v24 = vpop.permute.xlu0 %860  ;;  %v863_v26 = vpop.permute.xlu1 %862 }
 0x1c8   :  { %v1279_v34 = vadd.f32 %v1263_v39, %v1231_v1  ;;  %v1249_v46 = vld [vmem:[#allocation2 + $0x22] sm:$0xff]  ;;  %v1106_v47 = vld [vmem:[#allocation2 + $0x30] sm:$0xff]  ;;  %v920_v11 = vadd.f32 %v861_v24, %v1959_v61  ;;  %v921_v31 = vadd.f32 %v863_v26, %v1961_v45  ;;  %v1264_v33 = vmul.f32 0.40261996, %v1248_v53  ;;  %1088 = vst.msk [vmem:[#allocation2 + $0x50] sm:$0xff] %vm1076_vm3, %v1062_v57  ;;  %v1107_v15 = vld [vmem:[#allocation2 + $0x38] sm:$0xff] }
 0x1c9   :  { %v1216_v6 = vmul.f32 0.24420135, %v1200_v25  ;;  %v1217_v28 = vmul.f32 0.24420135, %v1201_v60  ;;  %v1122_v9 = vld [vmem:[#allocation2 + $0x34] sm:$0xff]  ;;  %v2074_v61 = vld [vmem:[#allocation22_spill] sm:$0xff] }
 0x1ca   :  { %1295 = vst.msk [vmem:[#allocation11 + $0x8] sm:$0xff] %vm1076_vm3, %v1279_v34  ;;  %v1170_v49 = vld [vmem:[#allocation2 + $0x31] sm:$0xff]  ;;  %v1138_v27 = vadd.f32 %v1122_v9, %v1106_v47  ;;  %v1265_v5 = vmul.f32 0.40261996, %v1249_v46  ;;  %v1064_v7 = vadd.f32 %v1901_v30, %v920_v11  ;;  %v1065_v21 = vadd.f32 %v1903_v32, %v921_v31  ;;  %v2077_v8 = vld [vmem:[#allocation18_spill] sm:$0xff]  ;;  %v2082_v34 = vld [vmem:[#allocation25_spill] sm:$0xff] }
 0x1cb   :  { %v1186_v14 = vld [vmem:[#allocation2 + $0x33] sm:$0xff]  ;;  %v1232_v0 = vadd.f32 %v1216_v6, %v1152_v58  ;;  %1089 = vst.msk [vmem:[#allocation2 + $0x58] sm:$0xf] %vm1079_vm4, %v1063_v48  ;;  %v1233_v29 = vadd.f32 %v1217_v28, %v1153_v2  ;;  %v663_v62 = vadd.f32 %v2074_v61, %v2073_v22  ;;  %v1123_v16 = vld [vmem:[#allocation2 + $0x3c] sm:$0xff]  ;;  %v865_v19 = vpop.permute.xlu0 %864  ;;  %v867_v51 = vpop.permute.xlu1 %866 }
 0x1cc   :  { %v1202_v55 = vadd.f32 %v1186_v14, %v1170_v49  ;;  %v1250_v35 = vld [vmem:[#allocation2 + $0x32] sm:$0xff]  ;;  %v1154_v4 = vmul.f32 0.054488685, %v1138_v27  ;;  %v1139_v52 = vadd.f32 %v1123_v16, %v1107_v15  ;;  %v1187_v39 = vld [vmem:[#allocation2 + $0x3b] sm:$0xff]  ;;  %1090 = vst.msk [vmem:[#allocation2 + $0x60] sm:$0xff] %vm1076_vm3, %v1064_v7  ;;  %1091 = vst.msk [vmem:[#allocation2 + $0x68] sm:$0xff] %vm1076_vm3, %v1065_v21  ;;  %v922_v30 = vadd.f32 %v865_v19, %v1963_v36 }
 0x1cd   :  { %v1280_v45 = vadd.f32 %v1264_v33, %v1232_v0  ;;  %v1171_v18 = vld [vmem:[#allocation2 + $0x39] sm:$0xff]  ;;  %v1281_v37 = vadd.f32 %v1265_v5, %v1233_v29  ;;  %v923_v32 = vadd.f32 %v867_v51, %v683_v23  ;;  %v1266_v42 = vmul.f32 0.40261996, %v1250_v35  ;;  %v2079_v25 = vld [vmem:[#allocation27_spill] sm:$0xff]  ;;  %v1108_v6 = vld [vmem:[#allocation2 + $0x48] sm:$0xff] }
 0x1ce   :  { %v1218_v13 = vmul.f32 0.24420135, %v1202_v55  ;;  %v2075_v59 = vld [vmem:[#allocation20_spill] sm:$0xff]  ;;  %v1203_v1 = vadd.f32 %v1187_v39, %v1171_v18  ;;  %v1155_v12 = vmul.f32 0.054488685, %v1139_v52  ;;  %v1066_v3 = vadd.f32 %v2079_v25, %v922_v30  ;;  %v2081_v43 = vld [vmem:[#allocation19_spill] sm:$0xff] }
 0x1cf   :  { %v664_v40 = vadd.f32 %v2076_v54, %v2075_v59  ;;  %1296 = vst.msk [vmem:[#allocation11 + $0x10] sm:$0xff] %vm1076_vm3, %v1280_v45  ;;  %v2078_v44 = vld [vmem:[#allocation24_spill] sm:$0xff]  ;;  %1297 = vst.msk [vmem:[#allocation11 + $0x18] sm:$0xff] %vm1076_vm3, %v1281_v37  ;;  %v686_v23 = vmul.f32 0.054488685, %v662_v50  ;;  %v666_v58 = vadd.f32 %v2082_v34, %v2081_v43  ;;  %v869_v2 = vpop.permute.xlu0 %868  ;;  %v871_v46 = vpop.permute.xlu1 %870  ;;  %v1109_v57 = vld [vmem:[#allocation2 + $0x50] sm:$0xff] }
 0x1d0   :  { %v1234_v56 = vadd.f32 %v1218_v13, %v1154_v4  ;;  %v665_v10 = vadd.f32 %v2078_v44, %v2077_v8  ;;  %v1251_v20 = vld [vmem:[#allocation2 + $0x3a] sm:$0xff]  ;;  %v1219_v60 = vmul.f32 0.24420135, %v1203_v1  ;;  %v687_v47 = vmul.f32 0.054488685, %v663_v62  ;;  %v1124_v48 = vld [vmem:[#allocation2 + $0x4c] sm:$0xff] }
 0x1d1   :  { %v2080_v41 = vld [vmem:[#allocation28_spill] sm:$0xff]  ;;  %v1172_v24 = vld [vmem:[#allocation2 + $0x49] sm:$0xff]  ;;  %1092 = vst.msk [vmem:[#allocation2 + $0x70] sm:$0xf] %vm1079_vm4, %v1066_v3  ;;  %v924_v26 = vadd.f32 %v869_v2, %v1979_v38  ;;  %v925_v50 = vadd.f32 %v871_v46, %v1982_v63  ;;  %v688_v28 = vmul.f32 0.054488685, %v664_v40  ;;  %v1140_v14 = vadd.f32 %v1124_v48, %v1108_v6 }
 0x1d2   :  { %v1067_v36 = vadd.f32 %v2080_v41, %v923_v32  ;;  %v1282_v53 = vadd.f32 %v1266_v42, %v1234_v56  ;;  %v1235_v9 = vadd.f32 %v1219_v60, %v1155_v12  ;;  %v1267_v49 = vmul.f32 0.40261996, %v1251_v20  ;;  %v1188_v11 = vld [vmem:[#allocation2 + $0x4b] sm:$0xff]  ;;  %v1125_v31 = vld [vmem:[#allocation2 + $0x54] sm:$0xff]  ;;  %v2083_v15 = vld [vmem:[#allocation29_spill] sm:$0xff] }
 0x1d3   :  { %v689_v0 = vmul.f32 0.054488685, %v665_v10  ;;  %v1204_v33 = vadd.f32 %v1188_v11, %v1172_v24  ;;  %v1252_v27 = vld [vmem:[#allocation2 + $0x4a] sm:$0xff]  ;;  %v1141_v55 = vadd.f32 %v1125_v31, %v1109_v57  ;;  %v1189_v5 = vld [vmem:[#allocation2 + $0x53] sm:$0xff]  ;;  %v1068_v35 = vadd.f32 %v2083_v15, %v924_v26  ;;  %v1110_v61 = vld [vmem:[#allocation2 + $0x60] sm:$0xff]  ;;  %v873_v62 = vpop.permute.xlu0 %872  ;;  %v875_v45 = vpop.permute.xlu1 %874 }
 0x1d4   :  { %1093 = vst.msk [vmem:[#allocation2 + $0x78] sm:$0xff] %vm1076_vm3, %v1067_v36  ;;  %1298 = vst.msk [vmem:[#allocation11 + $0x20] sm:$0xff] %vm1076_vm3, %v1282_v53  ;;  %v1173_v29 = vld [vmem:[#allocation2 + $0x51] sm:$0xff]  ;;  %v2016_v7 = vmul.f32 0.054488685, %v666_v58  ;;  %v1283_v38 = vadd.f32 %v1267_v49, %v1235_v9  ;;  %v1126_v16 = vld [vmem:[#allocation2 + $0x64] sm:$0xff]  ;;  %v926_v37 = vadd.f32 %v873_v62, %v686_v23  ;;  %v927_v59 = vadd.f32 %v875_v45, %v687_v47 }
 0x1d5   :  { %v1156_v63 = vmul.f32 0.054488685, %v1140_v14  ;;  %v1205_v21 = vadd.f32 %v1189_v5, %v1173_v29  ;;  %v1253_v22 = vld [vmem:[#allocation2 + $0x52] sm:$0xff]  ;;  %v1220_v4 = vmul.f32 0.24420135, %v1204_v33  ;;  %v1174_v18 = vld [vmem:[#allocation2 + $0x61] sm:$0xff]  ;;  %v1142_v30 = vadd.f32 %v1126_v16, %v1110_v61 }
 0x1d6   :  { %v1157_v13 = vmul.f32 0.054488685, %v1141_v55  ;;  %1094 = vst.msk [vmem:[#allocation2 + $0x80] sm:$0xff] %vm1076_vm3, %v1068_v35  ;;  %v2084_v19 = vld [vmem:[#allocation30_spill] sm:$0xff]  ;;  %1299 = vst.msk [vmem:[#allocation11 + $0x28] sm:$0xff] %vm1076_vm3, %v1283_v38  ;;  %v2085_v8 = vld [vmem:[#allocation31_spill] sm:$0xff] }
 0x1d7   :  { %v1069_v51 = vadd.f32 %v2084_v19, %v925_v50  ;;  %v1268_v52 = vmul.f32 0.40261996, %v1252_v27  ;;  %v1221_v39 = vmul.f32 0.24420135, %v1205_v21  ;;  %v1190_v32 = vld [vmem:[#allocation2 + $0x63] sm:$0xff]  ;;  %v1236_v54 = vadd.f32 %v1220_v4, %v1156_v63  ;;  %v2088_v43 = vld [vmem:[#allocation32_spill] sm:$0xff]  ;;  %v877_v58 = vpop.permute.xlu0 %876  ;;  %v879_v53 = vpop.permute.xlu1 %878 }
 0x1d8   :  { %v1269_v40 = vmul.f32 0.40261996, %v1253_v22  ;;  %v1111_v56 = vld [vmem:[#allocation2 + $0x68] sm:$0xff]  ;;  %v1206_v42 = vadd.f32 %v1190_v32, %v1174_v18  ;;  %v1070_v44 = vadd.f32 %v2085_v8, %v926_v37  ;;  %v2086_v10 = vld [vmem:[#allocation21_spill] sm:$0xff]  ;;  %v1158_v3 = vmul.f32 0.054488685, %v1142_v30 }
 0x1d9   :  { %v1254_v1 = vld [vmem:[#allocation2 + $0x62] sm:$0xff]  ;;  %1095 = vst.msk [vmem:[#allocation2 + $0x88] sm:$0xf] %vm1079_vm4, %v1069_v51  ;;  %v1237_v25 = vadd.f32 %v1221_v39, %v1157_v13  ;;  %v1127_v41 = vld [vmem:[#allocation2 + $0x6c] sm:$0xff]  ;;  %v1071_v34 = vadd.f32 %v2088_v43, %v927_v59  ;;  %v1284_v60 = vadd.f32 %v1268_v52, %v1236_v54  ;;  %v928_v24 = vadd.f32 %v877_v58, %v688_v28 }
 0x1da   :  { %v2087_v12 = vld [vmem:[#allocation26_spill] sm:$0xff]  ;;  %v1222_v6 = vmul.f32 0.24420135, %v1206_v42  ;;  %v1143_v2 = vadd.f32 %v1127_v41, %v1111_v56  ;;  %1096 = vst.msk [vmem:[#allocation2 + $0x90] sm:$0xff] %vm1076_vm3, %v1070_v44  ;;  %v1270_v57 = vmul.f32 0.40261996, %v1254_v1  ;;  %v929_v26 = vadd.f32 %v879_v53, %v689_v0 }
 0x1db   :  { %v667_v20 = vadd.f32 %v2087_v12, %v2086_v10  ;;  %v1175_v36 = vld [vmem:[#allocation2 + $0x69] sm:$0xff]  ;;  %v1285_v47 = vadd.f32 %v1269_v40, %v1237_v25  ;;  %1097 = vst.msk [vmem:[#allocation2 + $0x98] sm:$0xff] %vm1076_vm3, %v1071_v34  ;;  %1300 = vst.msk [vmem:[#allocation11 + $0x30] sm:$0xff] %vm1076_vm3, %v1284_v60  ;;  %v1112_v14 = vld [vmem:[#allocation2 + $0x78] sm:$0xff]  ;;  %v1072_v55 = vadd.f32 %v1921_v17, %v928_v24  ;;  %v881_v15 = vpop.permute.xlu0 %880  ;;  %v883_v35 = vpop.permute.xlu1 %882 }
 0x1dc   :  { %v1191_v23 = vld [vmem:[#allocation2 + $0x6b] sm:$0xff]  ;;  %v1238_v50 = vadd.f32 %v1222_v6, %v1158_v3  ;;  %v1159_v9 = vmul.f32 0.054488685, %v1143_v2  ;;  %v2089_v29 = vld [vmem:[#allocation33_spill] sm:$0xff]  ;;  %v930_v4 = vadd.f32 %v881_v15, %v2016_v7 }
 0x1dd   :  { %v1207_v46 = vadd.f32 %v1191_v23, %v1175_v36  ;;  %v1255_v48 = vld [vmem:[#allocation2 + $0x6a] sm:$0xff]  ;;  %v691_v11 = vmul.f32 0.054488685, %v667_v20  ;;  %1301 = vst.msk [vmem:[#allocation11 + $0x38] sm:$0xff] %vm1076_vm3, %v1285_v47  ;;  %v1113_v31 = vld [vmem:[#allocation2 + $0x80] sm:$0xff]  ;;  %v1073_v5 = vadd.f32 %v2089_v29, %v929_v26 }
 0x1de   :  { %v1128_v33 = vld [vmem:[#allocation2 + $0x7c] sm:$0xff]  ;;  %v1286_v28 = vadd.f32 %v1270_v57, %v1238_v50  ;;  %v1271_v38 = vmul.f32 0.40261996, %v1255_v48  ;;  %1098 = vst.msk [vmem:[#allocation2 + $0xa0] sm:$0xf] %vm1079_vm4, %v1072_v55 }
 0x1df   :  { %v1223_v49 = vmul.f32 0.24420135, %v1207_v46  ;;  %v1176_v27 = vld [vmem:[#allocation2 + $0x79] sm:$0xff]  ;;  %v1144_v63 = vadd.f32 %v1128_v33, %v1112_v14  ;;  %1099 = vst.msk [vmem:[#allocation2 + $0xa8] sm:$0xff] %vm1076_vm3, %v1073_v5  ;;  %v931_v17 = vadd.f32 %v883_v35, %v691_v11  ;;  %v1025_v30 = vpop.permute.xlu0 %1024  ;;  %v1027_v32 = vpop.permute.xlu1 %1026 }
 0x1e0   :  { %v1192_v21 = vld [vmem:[#allocation2 + $0x7b] sm:$0xff]  ;;  %v1129_v61 = vld [vmem:[#allocation2 + $0x84] sm:$0xff]  ;;  %1302 = vst.msk [vmem:[#allocation11 + $0x40] sm:$0xff] %vm1076_vm3, %v1286_v28  ;;  %v1074_v56 = vadd.f32 %v1025_v30, %v930_v4 }
 0x1e1   :  { %v1239_v0 = vadd.f32 %v1223_v49, %v1159_v9  ;;  %v1208_v22 = vadd.f32 %v1192_v21, %v1176_v27  ;;  %v1177_v62 = vld [vmem:[#allocation2 + $0x81] sm:$0xff]  ;;  %v1160_v16 = vmul.f32 0.054488685, %v1144_v63  ;;  %v1145_v19 = vadd.f32 %v1129_v61, %v1113_v31  ;;  %v1114_v39 = vld [vmem:[#allocation2 + $0x90] sm:$0xff] }
 0x1e2   :  { %v1193_v45 = vld [vmem:[#allocation2 + $0x83] sm:$0xff]  ;;  %v1256_v18 = vld [vmem:[#allocation2 + $0x7a] sm:$0xff]  ;;  %v1075_v7 = vadd.f32 %v1027_v32, %v931_v17  ;;  %v1178_v44 = vld [vmem:[#allocation2 + $0x91] sm:$0xff]  ;;  %1100 = vst.msk [vmem:[#allocation2 + $0xb0] sm:$0xff] %vm1076_vm3, %v1074_v56 }
 0x1e3   :  { %v1287_v13 = vadd.f32 %v1271_v38, %v1239_v0  ;;  %v1209_v51 = vadd.f32 %v1193_v45, %v1177_v62  ;;  %v1224_v37 = vmul.f32 0.24420135, %v1208_v22  ;;  %v1257_v52 = vld [vmem:[#allocation2 + $0x82] sm:$0xff]  ;;  %v1161_v59 = vmul.f32 0.054488685, %v1145_v19  ;;  %v1130_v40 = vld [vmem:[#allocation2 + $0x94] sm:$0xff] }
 0x1e4   :  { %v1272_v1 = vmul.f32 0.40261996, %v1256_v18  ;;  %v1146_v8 = vadd.f32 %v1130_v40, %v1114_v39  ;;  %v1194_v10 = vld [vmem:[#allocation2 + $0x93] sm:$0xff]  ;;  %v1273_v20 = vmul.f32 0.40261996, %v1257_v52 }
 0x1e5   :  { %1303 = vst.msk [vmem:[#allocation11 + $0x48] sm:$0xff] %vm1076_vm3, %v1287_v13  ;;  %v1225_v54 = vmul.f32 0.24420135, %v1209_v51  ;;  %v1240_v42 = vadd.f32 %v1224_v37, %v1160_v16  ;;  %v1210_v25 = vadd.f32 %v1194_v10, %v1178_v44  ;;  %v1115_v41 = vld [vmem:[#allocation2 + $0x98] sm:$0xff] }
 0x1e6   :  { %1101 = vst.msk [vmem:[#allocation2 + $0xb8] sm:$0xf] %vm1079_vm4, %v1075_v7  ;;  %v1162_v36 = vmul.f32 0.054488685, %v1146_v8  ;;  %v1258_v23 = vld [vmem:[#allocation2 + $0x92] sm:$0xff]  ;;  %v1131_v58 = vld [vmem:[#allocation2 + $0x9c] sm:$0xff] }
 0x1e7   :  { %v1241_v12 = vadd.f32 %v1225_v54, %v1161_v59  ;;  %v1288_v3 = vadd.f32 %v1272_v1, %v1240_v42  ;;  %v1226_v34 = vmul.f32 0.24420135, %v1210_v25  ;;  %v1179_v53 = vld [vmem:[#allocation2 + $0x99] sm:$0xff]  ;;  %v1147_v6 = vadd.f32 %v1131_v58, %v1115_v41  ;;  %v1116_v50 = vld [vmem:[#allocation2 + $0xa8] sm:$0xff] }
 0x1e8   :  { %v1195_v60 = vld [vmem:[#allocation2 + $0x9b] sm:$0xff]  ;;  %v1274_v47 = vmul.f32 0.40261996, %v1258_v23 }
 0x1e9   :  { %v1289_v43 = vadd.f32 %v1273_v20, %v1241_v12  ;;  %1304 = vst.msk [vmem:[#allocation11 + $0x50] sm:$0xff] %vm1076_vm3, %v1288_v3  ;;  %v1211_v2 = vadd.f32 %v1195_v60, %v1179_v53  ;;  %v1242_v46 = vadd.f32 %v1226_v34, %v1162_v36  ;;  %v1259_v57 = vld [vmem:[#allocation2 + $0x9a] sm:$0xff]  ;;  %v1163_v48 = vmul.f32 0.054488685, %v1147_v6  ;;  %v1117_v14 = vld [vmem:[#allocation2 + $0xb0] sm:$0xff] }
 0x1ea   :  { %v1275_v49 = vmul.f32 0.40261996, %v1259_v57  ;;  %v1132_v11 = vld [vmem:[#allocation2 + $0xac] sm:$0xff] }
 0x1eb   :  { %1305 = vst.msk [vmem:[#allocation11 + $0x58] sm:$0xff] %vm1076_vm3, %v1289_v43  ;;  %v1227_v24 = vmul.f32 0.24420135, %v1211_v2  ;;  %v1290_v26 = vadd.f32 %v1274_v47, %v1242_v46  ;;  %v1180_v31 = vld [vmem:[#allocation2 + $0xa9] sm:$0xff]  ;;  %v1148_v33 = vadd.f32 %v1132_v11, %v1116_v50 }
 0x1ec   :  { %v1196_v27 = vld [vmem:[#allocation2 + $0xab] sm:$0xff] }
 0x1ed   :  { %v1243_v9 = vadd.f32 %v1227_v24, %v1163_v48  ;;  %1306 = vst.msk [vmem:[#allocation11 + $0x60] sm:$0xff] %vm1076_vm3, %v1290_v26  ;;  %v1133_v55 = vld [vmem:[#allocation2 + $0xb4] sm:$0xff]  ;;  %v1212_v5 = vadd.f32 %v1196_v27, %v1180_v31  ;;  %v1164_v0 = vmul.f32 0.054488685, %v1148_v33  ;;  %v1260_v38 = vld [vmem:[#allocation2 + $0xaa] sm:$0xff] }
 0x1ee   :  { %v1149_v15 = vadd.f32 %v1133_v55, %v1117_v14  ;;  %v1181_v35 = vld [vmem:[#allocation2 + $0xb1] sm:$0xff]  ;;  %v1276_v4 = vmul.f32 0.40261996, %v1260_v38 }
 0x1ef   :  { %v1291_v29 = vadd.f32 %v1275_v49, %v1243_v9  ;;  %v1197_v28 = vld [vmem:[#allocation2 + $0xb3] sm:$0xff]  ;;  %v1228_v21 = vmul.f32 0.24420135, %v1212_v5 }
 0x1f0   :  { %v1213_v63 = vadd.f32 %v1197_v28, %v1181_v35  ;;  %v1165_v22 = vmul.f32 0.054488685, %v1149_v15  ;;  %v1261_v61 = vld [vmem:[#allocation2 + $0xb2] sm:$0xff] }
 0x1f1   :  { %1307 = vst.msk [vmem:[#allocation11 + $0x68] sm:$0xff] %vm1076_vm3, %v1291_v29  ;;  %v1244_v45 = vadd.f32 %v1228_v21, %v1164_v0  ;;  %v1277_v13 = vmul.f32 0.40261996, %v1261_v61 }
 0x1f2   :  { %v1229_v62 = vmul.f32 0.24420135, %v1213_v63 }
 0x1f3   :  { %v1292_v16 = vadd.f32 %v1276_v4, %v1244_v45 }
 0x1f4   :  { %v1245_v17 = vadd.f32 %v1229_v62, %v1165_v22 }
 0x1f5   :  { %1308 = vst.msk [vmem:[#allocation11 + $0x70] sm:$0xff] %vm1076_vm3, %v1292_v16 }
 0x1f6   :  { %v1293_v18 = vadd.f32 %v1277_v13, %v1245_v17 }
 0x1f8   :  { %1309 = vst.msk [vmem:[#allocation11 + $0x78] sm:$0xff] %vm1076_vm3, %v1293_v18 }
 0x1f9   :  { %1355 = shalt.err (!%p1352_p4)
}
 0x1fa   :  { %s1381_s30 = smov 128   ;;  %s1382_s3 = smov 8  }
 0x1fb   :  { %1321 = dma.vmem_to_hbm [thread:$0]  %s1316_s28, 2048, %s2050_s2, [#allocation10], %s1381_s30, %s1381_s30, %s1382_s3  }
 0x1fc   :  { %1366 = dma.done.wait [#allocation10], 2048  }
 0x1fd   :  { %1367 = vsyncadd [#allocation10], 4294965248 }
 0x1fe   :  { %1325 = vsyncpa [#allocation9], 1 }
 0x1ff   :  { %1326 = vsyncpa [#allocation10], 1 }

</bundles_post_ra>
